<compile_context>
chip_gen: v7x
topology: tpu7x:2x2x1
jax: 0.10.0
libtpu: 0.0.40
codegen_flags: <defaults>
</compile_context>

<pallas_src>
import functools

import numpy as np
import jax
import jax.numpy as jnp
from jax.experimental import pallas as pl
from jax.experimental.pallas import tpu as pltpu


# ---------------------------------------------------------------------------
# Pallas kernel
# ---------------------------------------------------------------------------
def _hoa_b_kernel(x_ref, bt_ref, o_ref, w_ref, *, act_factor):
    # x_ref : [K, G, TN] f32  -- arity-major, lane-major row tile of the input
    # bt_ref: [G*D, G*PP] f32 -- block-diagonal transposed params (PP = P rounded to 8)
    # o_ref : [TN, G*D]  f32  -- module output layout
    # w_ref : [G*PP, TN] f32  -- VMEM scratch for the weighted one-hot (W^T)
    K, G, TN = x_ref.shape
    GPP, _ = w_ref.shape
    PP = GPP // G
    P = 3 ** K
    ref_ind = (P - 1) // 2                      # == sum_{i<K} 3^i

    # ---- phase 1: per-arity quantities, all lane-major [G, TN] -----------------
    abs_j, contrib = [], []
    for j in range(K):
        xj = x_ref[j]                                           # [G, TN] f32
        abs_j.append(jnp.abs(xj))
        pj = 3 ** j
        contrib.append(jnp.where(xj >= 0.0, jnp.int32(pj), jnp.int32(-pj)))

    # ascending sort of the K |x| values: static elementwise sorting network
    cols = list(abs_j)
    for i in range(K - 1):
        for j in range(K - 1 - i):
            lo = jnp.minimum(cols[j], cols[j + 1])
            hi = jnp.maximum(cols[j], cols[j + 1])
            cols[j], cols[j + 1] = lo, hi

    # simplex coefficients and flattened base-3 vertex indices per rank k
    # (matches the torch flipped-cumsum index; ties only differ where coef_k == 0)
    coefs, idxs = [], []
    prev = None
    for k in range(K):
        tk = cols[k]                                            # k-th smallest |x|
        coefs.append(tk if k == 0 else tk - prev)
        prev = tk
        idx_k = jnp.full((G, TN), ref_ind, jnp.int32)
        for j in range(K):
            idx_k = idx_k + jnp.where(abs_j[j] >= tk, contrib[j], 0)
        idxs.append(idx_k)

    # ---- phase 2: weighted one-hot W^T (lane-major), one G-block at a time -----
    iota_p = jax.lax.broadcasted_iota(jnp.int32, (PP, TN), 0)
    for g in range(G):
        wg = jnp.zeros((PP, TN), jnp.float32)
        for k in range(K):
            hit = iota_p == idxs[k][g:g + 1, :]                 # sublane-broadcast cmp
            wg = wg + jnp.where(hit, coefs[k][g:g + 1, :], 0.0)
        w_ref[g * PP:(g + 1) * PP, :] = wg

    # ---- phase 3: single MXU matmul + small transpose + scaled store -----------
    out_t = jnp.dot(bt_ref[...], w_ref[...],
                    preferred_element_type=jnp.float32)         # [G*D, TN]
    res = jnp.transpose(out_t)                                  # [TN, G*D]
    if act_factor != 1.0:
        res = res * jnp.float32(act_factor)
    # TODO(synk): with G*D < 128 this is a masked (partial-lane) store; folding
    # rows into lanes needs a sublane<->lane relayout, so it is left as-is.
    o_ref[...] = res


# ---------------------------------------------------------------------------
# Wrapper
# ---------------------------------------------------------------------------
def high_order_activation_b(X, params, arity, act_factor=1.0):
    N, GK = X.shape
    G, P, D = params.shape
    K = int(arity)
    assert GK == G * K and P == 3 ** K
    PP = ((P + 7) // 8) * 8                                     # sublane-aligned block

    # Arity-major, lane-major view of the (small) input tensor: [K, G, N].
    # TODO(synk): this extra pass over X could be removed by fusing the
    # de-interleave into the pallas_call (allow_input_fusion) if it matters.
    Xt = jnp.transpose(X.reshape(N, G, K).astype(jnp.float32), (2, 1, 0))

    # Block-diagonal, transposed, PP-padded params:
    #   Bt[(g,d), (g',p)] = params[g, p, d] if g == g' and p < P else 0
    pf = jnp.transpose(params.astype(jnp.float32), (0, 2, 1))    # [G, D, P]
    pf = jnp.pad(pf, ((0, 0), (0, 0), (0, PP - P)))              # [G, D, PP]
    eye = jnp.eye(G, dtype=jnp.float32)[:, None, :, None]        # [G, 1, G, 1]
    Bt = (eye * pf[:, :, None, :]).reshape(G * D, G * PP)

    # Row-tile size: lane dim of the X block must be a multiple of 128 (or == N);
    # keep >= 2 grid steps for medium N so both TensorCores get work on v7x.
    if N <= 256:
        TN = N
    else:
        TN = min(512, max(128, (((N + 1) // 2) // 128) * 128))
    grid = ((N + TN - 1) // TN,)

    kernel = functools.partial(_hoa_b_kernel, act_factor=float(act_factor))

    return pl.pallas_call(
        kernel,
        out_shape=jax.ShapeDtypeStruct((N, G * D), jnp.float32),
        grid=grid,
        in_specs=[
            pl.BlockSpec((K, G, TN), lambda n: (0, 0, n)),        # X tile
            pl.BlockSpec((G * D, G * PP), lambda n: (0, 0)),      # params, VMEM-resident
        ],
        out_specs=pl.BlockSpec((TN, G * D), lambda n: (n, 0)),
        scratch_shapes=[pltpu.VMEM((G * PP, TN), jnp.float32)],
        compiler_params=pltpu.CompilerParams(
            dimension_semantics=("parallel",),
            vmem_limit_bytes=16 * 1024 * 1024,
        ),
    )(Xt, Bt)


# ---------------------------------------------------------------------------
# Deterministic parameter init (mirrors HighOrderActivationB.__init__)
# ---------------------------------------------------------------------------
def cartesian_power_np(values, power):
    if power == 0:
        return np.zeros([1, 0], dtype=np.float32)
    A = cartesian_power_np(values, power - 1)
    return np.concatenate(
        [np.concatenate([A, np.full([A.shape[0], 1], x, dtype=np.float32)], axis=1)
         for x in values], axis=0)


def init_params(arity, input_groups, out_dim, act_init=1.0, act_factor=1.0):
    coords = cartesian_power_np([-1.0, 0.0, 1.0], arity)          # [3**arity, arity]
    row_vals = np.max(coords, axis=1).reshape(1, 3 ** arity, 1) * (act_init / act_factor)
    return jnp.asarray(np.broadcast_to(row_vals, (input_groups, 3 ** arity, out_dim)).copy(),
                       dtype=jnp.float32)


# ---------------------------------------------------------------------------
# Pure-JAX reference (direct port of the torch code) for verification
# ---------------------------------------------------------------------------
def high_order_act_b_ref(A, params):
    # A: [N, G, K], params: [G, 3**K, D]
    N, G, K = A.shape
    ref_ind = sum(3 ** i for i in range(K))
    A_abs = jnp.abs(A)
    A_ind = jnp.argsort(A_abs, axis=2)
    A_sort = jnp.take_along_axis(A_abs, A_ind, axis=2)
    A_sgn = jnp.where(A >= 0, 1, -1).astype(jnp.int32)
    A_sgn = jnp.take_along_axis(A_sgn, A_ind, axis=2)
    A_diff = A_sort[:, :, 1:] - A_sort[:, :, :-1]
    coef = jnp.concatenate([A_sort[:, :, 0:1], A_diff], axis=2)    # [N, G, K]
    vals = A_sgn * (3 ** A_ind)
    suffix = jnp.flip(jnp.cumsum(jnp.flip(vals, axis=2), axis=2), axis=2) + ref_ind
    pg = params[jnp.arange(G)[:, None, None], jnp.transpose(suffix, (1, 0, 2)), :]  # [G,N,K,D]
    pg = jnp.transpose(pg, (1, 0, 2, 3))                           # [N, G, K, D]
    return jnp.sum(pg * coef[..., None], axis=2)                   # [N, G, D]


def reference_forward(X, params, arity, act_factor=1.0):
    N = X.shape[0]
    G, _, D = params.shape
    out1 = high_order_act_b_ref(X.reshape(N, G, arity).astype(jnp.float32),
                                params.astype(jnp.float32))
    return out1.reshape(N, G * D) * act_factor


# ---------------------------------------------------------------------------
if __name__ == "__main__":
    arity = 3          # K
    input_groups = 4   # G
    out_dim = 8        # D
    batch = 16         # N
    act_factor = 1.5

    key = jax.random.PRNGKey(0)
    kx, kp, kt, kb = jax.random.split(key, 4)
    X = jax.random.normal(kx, (batch, input_groups * arity), dtype=jnp.float32)

    # Module's deterministic initialization and a random-params case
    params0 = init_params(arity, input_groups, out_dim, 1.0, act_factor)
    params_rand = jax.random.normal(kp, (input_groups, 3 ** arity, out_dim),
                                    dtype=jnp.float32)
    for prm in (params0, params_rand):
        out = high_order_activation_b(X, prm, arity, act_factor)
        jax.block_until_ready(out)
        ref = reference_forward(X, prm, arity, act_factor)
        np.testing.assert_allclose(np.asarray(out), np.asarray(ref), rtol=1e-5, atol=1e-5)

    # Exact |.|-ties and zeros (tie-break invariance) at a non-multiple-of-8 batch.
    nb = 13
    Xt3 = jax.random.normal(kt, (nb, input_groups, arity), dtype=jnp.float32)
    Xt3 = Xt3.at[:, :, 1].set(Xt3[:, :, 0])          # duplicate column -> |.| ties
    Xt3 = Xt3.at[: nb // 2, 0, :].set(0.0)           # exact zeros
    X_ties = Xt3.reshape(nb, input_groups * arity)
    out_t = high_order_activation_b(X_ties, params_rand, arity, act_factor)
    jax.block_until_ready(out_t)
    ref_t = reference_forward(X_ties, params_rand, arity, act_factor)
    np.testing.assert_allclose(np.asarray(out_t), np.asarray(ref_t), rtol=1e-5, atol=1e-5)

    # Multi-tile parallel grid with a ragged last block (N > 256 path).
    nbig = 640
    Xb = jax.random.normal(kb, (nbig, input_groups * arity), dtype=jnp.float32)
    out_b = high_order_activation_b(Xb, params_rand, arity, act_factor)
    jax.block_until_ready(out_b)
    ref_b = reference_forward(Xb, params_rand, arity, act_factor)
    np.testing.assert_allclose(np.asarray(out_b), np.asarray(ref_b), rtol=1e-5, atol=1e-5)

    print("KERNEL_OK")
</pallas_src>

<mosaic_0001>
module attributes {stable_mosaic.version = 11 : i64} {
  func.func @_hoa_b_kernel(%arg0: i32, %arg1: memref<3x4x16xf32, #tpu.memory_space<vmem>>, %arg2: memref<32x128xf32, #tpu.memory_space<vmem>>, %arg3: memref<16x32xf32, #tpu.memory_space<vmem>>, %arg4: memref<128x16xf32, #tpu.memory_space<vmem>>) attributes {dimension_semantics = [#tpu.dimension_semantics<parallel>], iteration_bounds = array<i64: 1>, scalar_prefetch = 0 : i64, scratch_operands = 1 : i64, tpu.core_type = #tpu.core_type<tc>, window_params = [{transform_indices = @transform_0, window_bounds = array<i64: 3, 4, 16>}, {pipeline_mode = #tpu.pipeline_mode<synchronous>, transform_indices = @transform_1, window_bounds = array<i64: 32, 128>}, {transform_indices = @transform_2, window_bounds = array<i64: 16, 32>}]} {
    %c0 = arith.constant 0 : index
    %c0_0 = arith.constant 0 : index
    %c0_1 = arith.constant 0 : index
    %0 = vector.load %arg1[%c0, %c0_0, %c0_1] : memref<3x4x16xf32, #tpu.memory_space<vmem>>, vector<1x4x16xf32>
    %1 = vector.shape_cast %0 : vector<1x4x16xf32> to vector<4x16xf32>
    %2 = math.absf %1 : vector<4x16xf32>
    %cst = arith.constant 0.000000e+00 : f32
    %3 = vector.broadcast %cst : f32 to vector<4x16xf32>
    %4 = arith.cmpf oge, %1, %3 : vector<4x16xf32>
    %c1_i32 = arith.constant 1 : i32
    %c-1_i32 = arith.constant -1 : i32
    %5 = vector.broadcast %c1_i32 : i32 to vector<4x16xi32>
    %6 = vector.broadcast %c-1_i32 : i32 to vector<4x16xi32>
    %7 = arith.select %4, %5, %6 : vector<4x16xi1>, vector<4x16xi32>
    %c1 = arith.constant 1 : index
    %c0_2 = arith.constant 0 : index
    %c0_3 = arith.constant 0 : index
    %8 = vector.load %arg1[%c1, %c0_2, %c0_3] : memref<3x4x16xf32, #tpu.memory_space<vmem>>, vector<1x4x16xf32>
    %9 = vector.shape_cast %8 : vector<1x4x16xf32> to vector<4x16xf32>
    %10 = math.absf %9 : vector<4x16xf32>
    %cst_4 = arith.constant 0.000000e+00 : f32
    %11 = vector.broadcast %cst_4 : f32 to vector<4x16xf32>
    %12 = arith.cmpf oge, %9, %11 : vector<4x16xf32>
    %c3_i32 = arith.constant 3 : i32
    %c-3_i32 = arith.constant -3 : i32
    %13 = vector.broadcast %c3_i32 : i32 to vector<4x16xi32>
    %14 = vector.broadcast %c-3_i32 : i32 to vector<4x16xi32>
    %15 = arith.select %12, %13, %14 : vector<4x16xi1>, vector<4x16xi32>
    %c2 = arith.constant 2 : index
    %c0_5 = arith.constant 0 : index
    %c0_6 = arith.constant 0 : index
    %16 = vector.load %arg1[%c2, %c0_5, %c0_6] : memref<3x4x16xf32, #tpu.memory_space<vmem>>, vector<1x4x16xf32>
    %17 = vector.shape_cast %16 : vector<1x4x16xf32> to vector<4x16xf32>
    %18 = math.absf %17 : vector<4x16xf32>
    %cst_7 = arith.constant 0.000000e+00 : f32
    %19 = vector.broadcast %cst_7 : f32 to vector<4x16xf32>
    %20 = arith.cmpf oge, %17, %19 : vector<4x16xf32>
    %c9_i32 = arith.constant 9 : i32
    %c-9_i32 = arith.constant -9 : i32
    %21 = vector.broadcast %c9_i32 : i32 to vector<4x16xi32>
    %22 = vector.broadcast %c-9_i32 : i32 to vector<4x16xi32>
    %23 = arith.select %20, %21, %22 : vector<4x16xi1>, vector<4x16xi32>
    %24 = arith.minimumf %2, %10 : vector<4x16xf32>
    %25 = arith.maximumf %2, %10 : vector<4x16xf32>
    %26 = arith.minimumf %25, %18 : vector<4x16xf32>
    %27 = arith.maximumf %25, %18 : vector<4x16xf32>
    %28 = arith.minimumf %24, %26 : vector<4x16xf32>
    %29 = arith.maximumf %24, %26 : vector<4x16xf32>
    %c13_i32 = arith.constant 13 : i32
    %30 = vector.broadcast %c13_i32 : i32 to vector<4x16xi32>
    %31 = arith.cmpf oge, %2, %28 : vector<4x16xf32>
    %c0_i32 = arith.constant 0 : i32
    %32 = vector.broadcast %c0_i32 : i32 to vector<4x16xi32>
    %33 = arith.select %31, %7, %32 : vector<4x16xi1>, vector<4x16xi32>
    %34 = arith.addi %30, %33 : vector<4x16xi32>
    %35 = arith.cmpf oge, %10, %28 : vector<4x16xf32>
    %c0_i32_8 = arith.constant 0 : i32
    %36 = vector.broadcast %c0_i32_8 : i32 to vector<4x16xi32>
    %37 = arith.select %35, %15, %36 : vector<4x16xi1>, vector<4x16xi32>
    %38 = arith.addi %34, %37 : vector<4x16xi32>
    %39 = arith.cmpf oge, %18, %28 : vector<4x16xf32>
    %c0_i32_9 = arith.constant 0 : i32
    %40 = vector.broadcast %c0_i32_9 : i32 to vector<4x16xi32>
    %41 = arith.select %39, %23, %40 : vector<4x16xi1>, vector<4x16xi32>
    %42 = arith.addi %38, %41 : vector<4x16xi32>
    %43 = arith.subf %29, %28 : vector<4x16xf32>
    %c13_i32_10 = arith.constant 13 : i32
    %44 = vector.broadcast %c13_i32_10 : i32 to vector<4x16xi32>
    %45 = arith.cmpf oge, %2, %29 : vector<4x16xf32>
    %c0_i32_11 = arith.constant 0 : i32
    %46 = vector.broadcast %c0_i32_11 : i32 to vector<4x16xi32>
    %47 = arith.select %45, %7, %46 : vector<4x16xi1>, vector<4x16xi32>
    %48 = arith.addi %44, %47 : vector<4x16xi32>
    %49 = arith.cmpf oge, %10, %29 : vector<4x16xf32>
    %c0_i32_12 = arith.constant 0 : i32
    %50 = vector.broadcast %c0_i32_12 : i32 to vector<4x16xi32>
    %51 = arith.select %49, %15, %50 : vector<4x16xi1>, vector<4x16xi32>
    %52 = arith.addi %48, %51 : vector<4x16xi32>
    %53 = arith.cmpf oge, %18, %29 : vector<4x16xf32>
    %c0_i32_13 = arith.constant 0 : i32
    %54 = vector.broadcast %c0_i32_13 : i32 to vector<4x16xi32>
    %55 = arith.select %53, %23, %54 : vector<4x16xi1>, vector<4x16xi32>
    %56 = arith.addi %52, %55 : vector<4x16xi32>
    %57 = arith.subf %27, %29 : vector<4x16xf32>
    %c13_i32_14 = arith.constant 13 : i32
    %58 = vector.broadcast %c13_i32_14 : i32 to vector<4x16xi32>
    %59 = arith.cmpf oge, %2, %27 : vector<4x16xf32>
    %c0_i32_15 = arith.constant 0 : i32
    %60 = vector.broadcast %c0_i32_15 : i32 to vector<4x16xi32>
    %61 = arith.select %59, %7, %60 : vector<4x16xi1>, vector<4x16xi32>
    %62 = arith.addi %58, %61 : vector<4x16xi32>
    %63 = arith.cmpf oge, %10, %27 : vector<4x16xf32>
    %c0_i32_16 = arith.constant 0 : i32
    %64 = vector.broadcast %c0_i32_16 : i32 to vector<4x16xi32>
    %65 = arith.select %63, %15, %64 : vector<4x16xi1>, vector<4x16xi32>
    %66 = arith.addi %62, %65 : vector<4x16xi32>
    %67 = arith.cmpf oge, %18, %27 : vector<4x16xf32>
    %c0_i32_17 = arith.constant 0 : i32
    %68 = vector.broadcast %c0_i32_17 : i32 to vector<4x16xi32>
    %69 = arith.select %67, %23, %68 : vector<4x16xi1>, vector<4x16xi32>
    %70 = arith.addi %66, %69 : vector<4x16xi32>
    %71 = tpu.iota {dimensions = array<i32: 0>} : vector<32x16xi32>
    %cst_18 = arith.constant 0.000000e+00 : f32
    %72 = vector.broadcast %cst_18 : f32 to vector<32x16xf32>
    %73 = vector.extract_strided_slice %42 {offsets = [0, 0], sizes = [1, 16], strides = [1, 1]} : vector<4x16xi32> to vector<1x16xi32>
    %74 = vector.broadcast %73 : vector<1x16xi32> to vector<32x16xi32>
    %75 = arith.cmpi eq, %71, %74 : vector<32x16xi32>
    %76 = vector.extract_strided_slice %28 {offsets = [0, 0], sizes = [1, 16], strides = [1, 1]} : vector<4x16xf32> to vector<1x16xf32>
    %cst_19 = arith.constant 0.000000e+00 : f32
    %77 = vector.shape_cast %76 : vector<1x16xf32> to vector<1x16xf32>
    %78 = vector.broadcast %77 : vector<1x16xf32> to vector<32x16xf32>
    %79 = vector.broadcast %cst_19 : f32 to vector<32x16xf32>
    %80 = arith.select %75, %78, %79 : vector<32x16xi1>, vector<32x16xf32>
    %81 = arith.addf %72, %80 : vector<32x16xf32>
    %82 = vector.extract_strided_slice %56 {offsets = [0, 0], sizes = [1, 16], strides = [1, 1]} : vector<4x16xi32> to vector<1x16xi32>
    %83 = vector.broadcast %82 : vector<1x16xi32> to vector<32x16xi32>
    %84 = arith.cmpi eq, %71, %83 : vector<32x16xi32>
    %85 = vector.extract_strided_slice %43 {offsets = [0, 0], sizes = [1, 16], strides = [1, 1]} : vector<4x16xf32> to vector<1x16xf32>
    %cst_20 = arith.constant 0.000000e+00 : f32
    %86 = vector.shape_cast %85 : vector<1x16xf32> to vector<1x16xf32>
    %87 = vector.broadcast %86 : vector<1x16xf32> to vector<32x16xf32>
    %88 = vector.broadcast %cst_20 : f32 to vector<32x16xf32>
    %89 = arith.select %84, %87, %88 : vector<32x16xi1>, vector<32x16xf32>
    %90 = arith.addf %81, %89 : vector<32x16xf32>
    %91 = vector.extract_strided_slice %70 {offsets = [0, 0], sizes = [1, 16], strides = [1, 1]} : vector<4x16xi32> to vector<1x16xi32>
    %92 = vector.broadcast %91 : vector<1x16xi32> to vector<32x16xi32>
    %93 = arith.cmpi eq, %71, %92 : vector<32x16xi32>
    %94 = vector.extract_strided_slice %57 {offsets = [0, 0], sizes = [1, 16], strides = [1, 1]} : vector<4x16xf32> to vector<1x16xf32>
    %cst_21 = arith.constant 0.000000e+00 : f32
    %95 = vector.shape_cast %94 : vector<1x16xf32> to vector<1x16xf32>
    %96 = vector.broadcast %95 : vector<1x16xf32> to vector<32x16xf32>
    %97 = vector.broadcast %cst_21 : f32 to vector<32x16xf32>
    %98 = arith.select %93, %96, %97 : vector<32x16xi1>, vector<32x16xf32>
    %99 = arith.addf %90, %98 : vector<32x16xf32>
    %c0_22 = arith.constant 0 : index
    %c0_23 = arith.constant 0 : index
    %100 = vector.load %arg4[%c0_22, %c0_23] : memref<128x16xf32, #tpu.memory_space<vmem>>, vector<32x16xf32>
    tpu.vector_store %arg4[%c0_22, %c0_23], %99 {strides = array<i32>} : memref<128x16xf32, #tpu.memory_space<vmem>>, vector<32x16xf32>,
    %cst_24 = arith.constant 0.000000e+00 : f32
    %101 = vector.broadcast %cst_24 : f32 to vector<32x16xf32>
    %102 = vector.extract_strided_slice %42 {offsets = [1, 0], sizes = [1, 16], strides = [1, 1]} : vector<4x16xi32> to vector<1x16xi32>
    %103 = vector.broadcast %102 : vector<1x16xi32> to vector<32x16xi32>
    %104 = arith.cmpi eq, %71, %103 : vector<32x16xi32>
    %105 = vector.extract_strided_slice %28 {offsets = [1, 0], sizes = [1, 16], strides = [1, 1]} : vector<4x16xf32> to vector<1x16xf32>
    %cst_25 = arith.constant 0.000000e+00 : f32
    %106 = vector.shape_cast %105 : vector<1x16xf32> to vector<1x16xf32>
    %107 = vector.broadcast %106 : vector<1x16xf32> to vector<32x16xf32>
    %108 = vector.broadcast %cst_25 : f32 to vector<32x16xf32>
    %109 = arith.select %104, %107, %108 : vector<32x16xi1>, vector<32x16xf32>
    %110 = arith.addf %101, %109 : vector<32x16xf32>
    %111 = vector.extract_strided_slice %56 {offsets = [1, 0], sizes = [1, 16], strides = [1, 1]} : vector<4x16xi32> to vector<1x16xi32>
    %112 = vector.broadcast %111 : vector<1x16xi32> to vector<32x16xi32>
    %113 = arith.cmpi eq, %71, %112 : vector<32x16xi32>
    %114 = vector.extract_strided_slice %43 {offsets = [1, 0], sizes = [1, 16], strides = [1, 1]} : vector<4x16xf32> to vector<1x16xf32>
    %cst_26 = arith.constant 0.000000e+00 : f32
    %115 = vector.shape_cast %114 : vector<1x16xf32> to vector<1x16xf32>
    %116 = vector.broadcast %115 : vector<1x16xf32> to vector<32x16xf32>
    %117 = vector.broadcast %cst_26 : f32 to vector<32x16xf32>
    %118 = arith.select %113, %116, %117 : vector<32x16xi1>, vector<32x16xf32>
    %119 = arith.addf %110, %118 : vector<32x16xf32>
    %120 = vector.extract_strided_slice %70 {offsets = [1, 0], sizes = [1, 16], strides = [1, 1]} : vector<4x16xi32> to vector<1x16xi32>
    %121 = vector.broadcast %120 : vector<1x16xi32> to vector<32x16xi32>
    %122 = arith.cmpi eq, %71, %121 : vector<32x16xi32>
    %123 = vector.extract_strided_slice %57 {offsets = [1, 0], sizes = [1, 16], strides = [1, 1]} : vector<4x16xf32> to vector<1x16xf32>
    %cst_27 = arith.constant 0.000000e+00 : f32
    %124 = vector.shape_cast %123 : vector<1x16xf32> to vector<1x16xf32>
    %125 = vector.broadcast %124 : vector<1x16xf32> to vector<32x16xf32>
    %126 = vector.broadcast %cst_27 : f32 to vector<32x16xf32>
    %127 = arith.select %122, %125, %126 : vector<32x16xi1>, vector<32x16xf32>
    %128 = arith.addf %119, %127 : vector<32x16xf32>
    %c32 = arith.constant 32 : index
    %c0_28 = arith.constant 0 : index
    %129 = vector.load %arg4[%c32, %c0_28] : memref<128x16xf32, #tpu.memory_space<vmem>>, vector<32x16xf32>
    tpu.vector_store %arg4[%c32, %c0_28], %128 {strides = array<i32>} : memref<128x16xf32, #tpu.memory_space<vmem>>, vector<32x16xf32>,
    %cst_29 = arith.constant 0.000000e+00 : f32
    %130 = vector.broadcast %cst_29 : f32 to vector<32x16xf32>
    %131 = vector.extract_strided_slice %42 {offsets = [2, 0], sizes = [1, 16], strides = [1, 1]} : vector<4x16xi32> to vector<1x16xi32>
    %132 = vector.broadcast %131 : vector<1x16xi32> to vector<32x16xi32>
    %133 = arith.cmpi eq, %71, %132 : vector<32x16xi32>
    %134 = vector.extract_strided_slice %28 {offsets = [2, 0], sizes = [1, 16], strides = [1, 1]} : vector<4x16xf32> to vector<1x16xf32>
    %cst_30 = arith.constant 0.000000e+00 : f32
    %135 = vector.shape_cast %134 : vector<1x16xf32> to vector<1x16xf32>
    %136 = vector.broadcast %135 : vector<1x16xf32> to vector<32x16xf32>
    %137 = vector.broadcast %cst_30 : f32 to vector<32x16xf32>
    %138 = arith.select %133, %136, %137 : vector<32x16xi1>, vector<32x16xf32>
    %139 = arith.addf %130, %138 : vector<32x16xf32>
    %140 = vector.extract_strided_slice %56 {offsets = [2, 0], sizes = [1, 16], strides = [1, 1]} : vector<4x16xi32> to vector<1x16xi32>
    %141 = vector.broadcast %140 : vector<1x16xi32> to vector<32x16xi32>
    %142 = arith.cmpi eq, %71, %141 : vector<32x16xi32>
    %143 = vector.extract_strided_slice %43 {offsets = [2, 0], sizes = [1, 16], strides = [1, 1]} : vector<4x16xf32> to vector<1x16xf32>
    %cst_31 = arith.constant 0.000000e+00 : f32
    %144 = vector.shape_cast %143 : vector<1x16xf32> to vector<1x16xf32>
    %145 = vector.broadcast %144 : vector<1x16xf32> to vector<32x16xf32>
    %146 = vector.broadcast %cst_31 : f32 to vector<32x16xf32>
    %147 = arith.select %142, %145, %146 : vector<32x16xi1>, vector<32x16xf32>
    %148 = arith.addf %139, %147 : vector<32x16xf32>
    %149 = vector.extract_strided_slice %70 {offsets = [2, 0], sizes = [1, 16], strides = [1, 1]} : vector<4x16xi32> to vector<1x16xi32>
    %150 = vector.broadcast %149 : vector<1x16xi32> to vector<32x16xi32>
    %151 = arith.cmpi eq, %71, %150 : vector<32x16xi32>
    %152 = vector.extract_strided_slice %57 {offsets = [2, 0], sizes = [1, 16], strides = [1, 1]} : vector<4x16xf32> to vector<1x16xf32>
    %cst_32 = arith.constant 0.000000e+00 : f32
    %153 = vector.shape_cast %152 : vector<1x16xf32> to vector<1x16xf32>
    %154 = vector.broadcast %153 : vector<1x16xf32> to vector<32x16xf32>
    %155 = vector.broadcast %cst_32 : f32 to vector<32x16xf32>
    %156 = arith.select %151, %154, %155 : vector<32x16xi1>, vector<32x16xf32>
    %157 = arith.addf %148, %156 : vector<32x16xf32>
    %c64 = arith.constant 64 : index
    %c0_33 = arith.constant 0 : index
    %158 = vector.load %arg4[%c64, %c0_33] : memref<128x16xf32, #tpu.memory_space<vmem>>, vector<32x16xf32>
    tpu.vector_store %arg4[%c64, %c0_33], %157 {strides = array<i32>} : memref<128x16xf32, #tpu.memory_space<vmem>>, vector<32x16xf32>,
    %cst_34 = arith.constant 0.000000e+00 : f32
    %159 = vector.broadcast %cst_34 : f32 to vector<32x16xf32>
    %160 = vector.extract_strided_slice %42 {offsets = [3, 0], sizes = [1, 16], strides = [1, 1]} : vector<4x16xi32> to vector<1x16xi32>
    %161 = vector.broadcast %160 : vector<1x16xi32> to vector<32x16xi32>
    %162 = arith.cmpi eq, %71, %161 : vector<32x16xi32>
    %163 = vector.extract_strided_slice %28 {offsets = [3, 0], sizes = [1, 16], strides = [1, 1]} : vector<4x16xf32> to vector<1x16xf32>
    %cst_35 = arith.constant 0.000000e+00 : f32
    %164 = vector.shape_cast %163 : vector<1x16xf32> to vector<1x16xf32>
    %165 = vector.broadcast %164 : vector<1x16xf32> to vector<32x16xf32>
    %166 = vector.broadcast %cst_35 : f32 to vector<32x16xf32>
    %167 = arith.select %162, %165, %166 : vector<32x16xi1>, vector<32x16xf32>
    %168 = arith.addf %159, %167 : vector<32x16xf32>
    %169 = vector.extract_strided_slice %56 {offsets = [3, 0], sizes = [1, 16], strides = [1, 1]} : vector<4x16xi32> to vector<1x16xi32>
    %170 = vector.broadcast %169 : vector<1x16xi32> to vector<32x16xi32>
    %171 = arith.cmpi eq, %71, %170 : vector<32x16xi32>
    %172 = vector.extract_strided_slice %43 {offsets = [3, 0], sizes = [1, 16], strides = [1, 1]} : vector<4x16xf32> to vector<1x16xf32>
    %cst_36 = arith.constant 0.000000e+00 : f32
    %173 = vector.shape_cast %172 : vector<1x16xf32> to vector<1x16xf32>
    %174 = vector.broadcast %173 : vector<1x16xf32> to vector<32x16xf32>
    %175 = vector.broadcast %cst_36 : f32 to vector<32x16xf32>
    %176 = arith.select %171, %174, %175 : vector<32x16xi1>, vector<32x16xf32>
    %177 = arith.addf %168, %176 : vector<32x16xf32>
    %178 = vector.extract_strided_slice %70 {offsets = [3, 0], sizes = [1, 16], strides = [1, 1]} : vector<4x16xi32> to vector<1x16xi32>
    %179 = vector.broadcast %178 : vector<1x16xi32> to vector<32x16xi32>
    %180 = arith.cmpi eq, %71, %179 : vector<32x16xi32>
    %181 = vector.extract_strided_slice %57 {offsets = [3, 0], sizes = [1, 16], strides = [1, 1]} : vector<4x16xf32> to vector<1x16xf32>
    %cst_37 = arith.constant 0.000000e+00 : f32
    %182 = vector.shape_cast %181 : vector<1x16xf32> to vector<1x16xf32>
    %183 = vector.broadcast %182 : vector<1x16xf32> to vector<32x16xf32>
    %184 = vector.broadcast %cst_37 : f32 to vector<32x16xf32>
    %185 = arith.select %180, %183, %184 : vector<32x16xi1>, vector<32x16xf32>
    %186 = arith.addf %177, %185 : vector<32x16xf32>
    %c96 = arith.constant 96 : index
    %c0_38 = arith.constant 0 : index
    %187 = vector.load %arg4[%c96, %c0_38] : memref<128x16xf32, #tpu.memory_space<vmem>>, vector<32x16xf32>
    tpu.vector_store %arg4[%c96, %c0_38], %186 {strides = array<i32>} : memref<128x16xf32, #tpu.memory_space<vmem>>, vector<32x16xf32>,
    %c0_39 = arith.constant 0 : index
    %c0_40 = arith.constant 0 : index
    %188 = vector.load %arg2[%c0_39, %c0_40] : memref<32x128xf32, #tpu.memory_space<vmem>>, vector<32x128xf32>
    %c0_41 = arith.constant 0 : index
    %c0_42 = arith.constant 0 : index
    %189 = vector.load %arg4[%c0_41, %c0_42] : memref<128x16xf32, #tpu.memory_space<vmem>>, vector<128x16xf32>
    %cst_43 = arith.constant dense<0.000000e+00> : vector<32x16xf32>
    %190 = tpu.matmul %188, %189, %cst_43 {dimension_numbers = #tpu.dot_dimension_numbers<[1], [0], [0], [1], [0, 0, 1, 1], [], []>} : vector<32x128xf32>, vector<128x16xf32>, vector<32x16xf32> -> vector<32x16xf32>
    %191 = tpu.transpose %190, [1, 0] : vector<32x16xf32> -> vector<16x32xf32>
    %cst_44 = arith.constant 1.500000e+00 : f32
    %192 = vector.broadcast %cst_44 : f32 to vector<16x32xf32>
    %193 = arith.mulf %191, %192 : vector<16x32xf32>
    %c0_45 = arith.constant 0 : index
    %c0_46 = arith.constant 0 : index
    %194 = vector.load %arg3[%c0_45, %c0_46] : memref<16x32xf32, #tpu.memory_space<vmem>>, vector<16x32xf32>
    tpu.vector_store %arg3[%c0_45, %c0_46], %193 {strides = array<i32>} : memref<16x32xf32, #tpu.memory_space<vmem>>, vector<16x32xf32>,
    return
  }
  func.func @transform_0(%arg0: i32) -> (i32, i32, i32) {
    %c0_i32 = arith.constant 0 : i32
    %c0_i32_0 = arith.constant 0 : i32
    %c0_i32_1 = arith.constant 0 : i32
    return %c0_i32, %c0_i32_0, %arg0 : i32, i32, i32
  }
  func.func @transform_1(%arg0: i32) -> (i32, i32) {
    %c0_i32 = arith.constant 0 : i32
    %c0_i32_0 = arith.constant 0 : i32
    %c0_i32_1 = arith.constant 0 : i32
    return %c0_i32, %c0_i32_0 : i32, i32
  }
  func.func @transform_2(%arg0: i32) -> (i32, i32) {
    %c0_i32 = arith.constant 0 : i32
    %c0_i32_0 = arith.constant 0 : i32
    return %arg0, %c0_i32 : i32, i32
  }
}

</mosaic_0001>

<bundles_post_ra>
// kernel: tpu_custom_call.1
= control target key start
LH: loop header
LB: loop body
LE: loop exit
PB: predicated region body
PF: predicated region fallthrough
CT: control target
= control target key end

     0   :  { %7 = vsyncpa [#allocation4], 0  ;;  %s979_s0 = inlined_call_operand.hbm [shape: f32[3,4,16], index: 0, kind: input, shape index: {}]   ;;  %s980_s1 = inlined_call_operand.hbm [shape: f32[32,128], index: 1, kind: input, shape index: {}]   ;;  %s981_s2 = inlined_call_operand.hbm [shape: f32[16,32], index: 2, kind: output, shape index: {}]  }
   0x1   :  { %8 = vsyncpa [#allocation7], 0 }
   0x2   :  { %9 = vsyncpa [#allocation5], 0  ;;  %s700_s9 = smov [#allocation3]   ;;  %s628_s13 = scalar_lea.hbm %s979_s0, 192 }
   0x3   :  { %s15_s10 = sshll.u32 %s700_s9, 4  ;;  %p629_p0 = scmp.ne.s32.totalorder %s979_s0, %s628_s13  ;;  %s16_s10 = int_to_ptr.vmem [resolvable:$true] %s15_s10 }
   0x4   :  { %p632_p1 = scmp.lt.u32.totalorder %s628_s13, %s979_s0 }
   0x6   :  { %p634_p2 = pnand %p632_p1, %p629_p0 }
   0x8   :  { %637 = shalt.err (!%p634_p2)
}
   0x9   :  { %s638_s18 = scalar_lea.vmem %s16_s10, 192  ;;  %p643_p4 = scmp.lt.s32.totalorder %s16_s10, %s16_s10 }
   0xa   :  { %p639_p3 = scmp.ne.s32.totalorder %s16_s10, %s638_s18  ;;  %p644_p5 = scmp.lt.s32.totalorder %s638_s18, %s638_s18 }
   0xc   :  { %p645_p6 = por %p644_p5, %p643_p4 }
   0xe   :  { %p646_p7 = pnand %p645_p6, %p639_p3 }
  0x10   :  { %649 = shalt.err (!%p646_p7)
}
  0x11   :  { %s701_s19 = smov 64   ;;  %s702_s20 = smov 4  }
  0x12   :  { %21 = dma.hbm_to_vmem [thread:$0]  %s979_s0, 192, %s16_s10, [#allocation4], %s701_s19, %s701_s19, %s702_s20  }
  0x13   :  { %s703_s23 = smov [#allocation6]   ;;  %s650_s27 = scalar_lea.hbm %s980_s1, 512 }
  0x14   :  { %s27_s24 = sshll.u32 %s703_s23, 4  ;;  %p651_p8 = scmp.ne.s32.totalorder %s980_s1, %s650_s27  ;;  %s28_s24 = int_to_ptr.vmem [resolvable:$true] %s27_s24 }
  0x15   :  { %p654_p9 = scmp.lt.u32.totalorder %s650_s27, %s980_s1 }
  0x17   :  { %p656_p10 = pnand %p654_p9, %p651_p8 }
  0x19   :  { %659 = shalt.err (!%p656_p10)
}
  0x1a   :  { %s660_s4 = scalar_lea.vmem %s28_s24, 512  ;;  %p665_p12 = scmp.lt.s32.totalorder %s28_s24, %s28_s24 }
  0x1b   :  { %p661_p11 = scmp.ne.s32.totalorder %s28_s24, %s660_s4  ;;  %p666_p13 = scmp.lt.s32.totalorder %s660_s4, %s660_s4 }
  0x1d   :  { %p667_p0 = por %p666_p13, %p665_p12 }
  0x1f   :  { %p668_p1 = pnand %p667_p0, %p661_p11 }
  0x21   :  { %671 = shalt.err (!%p668_p1)
}
  0x22   :  { %s704_s0 = smov 128   ;;  %s705_s5 = smov 8  }
  0x23   :  { %33 = dma.hbm_to_vmem [thread:$0]  %s980_s1, 512, %s28_s24, [#allocation7], %s704_s0, %s704_s0, %s705_s5  }
  0x24   :  { %694 = dma.done.wait [#allocation4], 192  }
  0x25   :  { %695 = vsyncadd [#allocation4], 4294967104 }
  0x26   :  { %696 = dma.done.wait [#allocation7], 512  }
  0x27   :  { %697 = vsyncadd [#allocation7], 4294966784  ;;  %v89_v0 = vlaneseq  ;;  %v40_v2 = vld [vmem:[#allocation3] sm:$0xf]  ;;  %v45_v3 = vld [vmem:[#allocation3 + $0x4] sm:$0xf] }
  0x28   :  { %v50_v4 = vld [vmem:[#allocation3 + $0x8] sm:$0xf]  ;;  %v41_v5 = vand.u32 2147483647, %v40_v2  ;;  %v46_v6 = vand.u32 2147483647, %v45_v3 }
  0x29   :  { %v752_v1 = vshrl.u32 %v89_v0, 7  ;;  %vm42_vm0 = vcmp.ge.f32.partialorder %v40_v2, 0.0  ;;  %v51_v7 = vand.u32 2147483647, %v50_v4  ;;  %v351_v8 = vld [vmem:[#allocation6] sm:$0xff]  ;;  %vm47_vm1 = vcmp.ge.f32.partialorder %v45_v3, 0.0 }
  0x2a   :  { %vm52_vm2 = vcmp.ge.f32.partialorder %v50_v4, 0.0  ;;  %v54_v9 = vmin.f32 %v41_v5, %v46_v6  ;;  %v55_v10 = vmax.f32 %v41_v5, %v46_v6  ;;  %563 = vmatprep.mubr.f32.mxu0 %v351_v8  ;;  %v353_v11 = vld [vmem:[#allocation6 + $0x10] sm:$0xff]  ;;  %v706_v19 = vmov 4294967295   ;;  %s709_s1 = smov [#allocation8]  }
  0x2b   :  { %v755_v12 = vadd.s32 8, %v752_v1  ;;  %v758_v13 = vsub.s32 0, %v752_v1  ;;  %v761_v14 = vadd.s32 16, %v752_v1  ;;  %566 = vmatprep.mubr.f32.mxu1 %v353_v11  ;;  %v764_v17 = vadd.s32 24, %v752_v1  ;;  %s498_s8 = sshll.u32 %s709_s1, 4  ;;  %s499_s8 = int_to_ptr.vmem [resolvable:$true] %s498_s8 }
  0x2c   :  { %v56_v15 = vmin.f32 %v55_v10, %v51_v7  ;;  %v57_v16 = vmax.f32 %v55_v10, %v51_v7  ;;  %v767_v18 = vsub.s32 1, %v752_v1  ;;  %v43_v20 = vsel %vm42_vm0, 1, %v706_v19  ;;  %s672_s9 = scalar_lea.vmem %s499_s8, 256  ;;  %p677_p3 = scmp.lt.s32.totalorder %s499_s8, %s499_s8 }
  0x2d   :  { %v707_v21 = vmov 4294967293   ;;  %v708_v23 = vmov 4294967287   ;;  %v773_v25 = vsub.s32 2, %v752_v1  ;;  %v778_v30 = vsub.s32 3, %v752_v1  ;;  %p673_p2 = scmp.ne.s32.totalorder %s499_s8, %s672_s9  ;;  %p678_p4 = scmp.lt.s32.totalorder %s672_s9, %s672_s9 }
  0x2e   :  { %v48_v22 = vsel %vm47_vm1, 3, %v707_v21  ;;  %v53_v24 = vsel %vm52_vm2, 9, %v708_v23  ;;  %v775_v26 = vmin.f32 %v54_v9, %v56_v15  ;;  %v59_v27 = vmax.f32 %v54_v9, %v56_v15 }
  0x2f   :  { %vm80_vm3 = vcmp.ge.f32.partialorder %v41_v5, %v57_v16  ;;  %vm83_vm4 = vcmp.ge.f32.partialorder %v46_v6, %v57_v16  ;;  %vm86_vm5 = vcmp.ge.f32.partialorder %v51_v7, %v57_v16  ;;  %vm154_vm12 = vcmask 130048   ;;  %p679_p5 = por %p678_p4, %p677_p3 }
  0x30   :  { %v81_v28 = vsel %vm80_vm3, %v43_v20, 0  ;;  %v84_v29 = vsel %vm83_vm4, %v48_v22, 0  ;;  %vm60_vm6 = vcmp.ge.f32.partialorder %v41_v5, %v775_v26  ;;  %vm63_vm7 = vcmp.ge.f32.partialorder %v46_v6, %v775_v26 }
  0x31   :  { %vm66_vm8 = vcmp.ge.f32.partialorder %v51_v7, %v775_v26  ;;  %v784_v31 = vsub.f32 %v59_v27, %v775_v26  ;;  %v61_v32 = vsel %vm60_vm6, %v43_v20, 0  ;;  %v64_v33 = vsel %vm63_vm7, %v48_v22, 0  ;;  %p680_p6 = pnand %p679_p5, %p673_p2 }
  0x32   :  { %v67_v34 = vsel %vm66_vm8, %v53_v24, 0  ;;  %vm70_vm9 = vcmp.ge.f32.partialorder %v41_v5, %v59_v27  ;;  %v62_v35 = vadd.s32 13, %v61_v32  ;;  %vm73_vm10 = vcmp.ge.f32.partialorder %v46_v6, %v59_v27 }
  0x33   :  { %v71_v36 = vsel %vm70_vm9, %v43_v20, 0  ;;  %vm76_vm11 = vcmp.ge.f32.partialorder %v51_v7, %v59_v27  ;;  %v74_v38 = vsel %vm73_vm10, %v48_v22, 0  ;;  %v786_v40 = vsub.f32 %v57_v16, %v59_v27 }
  0x34   :  { %v72_v37 = vadd.s32 13, %v71_v36  ;;  %v77_v39 = vsel %vm76_vm11, %v53_v24, 0  ;;  %v65_v41 = vadd.s32 %v64_v33, %v62_v35  ;;  %v82_v42 = vadd.s32 13, %v81_v28 }
  0x35   :  { %v87_v43 = vsel %vm86_vm5, %v53_v24, 0  ;;  %v105_v44 = vrot.slane %v775_v26, %v758_v13  ;;  %v125_v46 = vrot.slane %v784_v31, %v758_v13  ;;  %v145_v47 = vrot.slane %v786_v40, %v758_v13 }
  0x36   :  { %v75_v45 = vadd.s32 %v74_v38, %v72_v37  ;;  %v797_v48 = vrot.slane %v775_v26, %v767_v18  ;;  %v68_v49 = vadd.s32 %v67_v34, %v65_v41  ;;  %v85_v50 = vadd.s32 %v84_v29, %v82_v42 }
  0x37   :  { %v801_v51 = vrot.slane %v784_v31, %v767_v18  ;;  %v805_v52 = vrot.slane %v786_v40, %v767_v18  ;;  %v811_v54 = vrot.slane %v775_v26, %v773_v25  ;;  %v815_v55 = vrot.slane %v784_v31, %v773_v25 }
  0x38   :  { %v807_v53 = vadd.s32 %v77_v39, %v75_v45  ;;  %v819_v56 = vrot.slane %v786_v40, %v773_v25  ;;  %v821_v57 = vadd.s32 %v87_v43, %v85_v50  ;;  %v97_v58 = vrot.slane %v68_v49, %v758_v13 }
  0x39   :  { %v162_v59 = vrot.slane %v68_v49, %v767_v18  ;;  %v826_v60 = vrot.slane %v68_v49, %v773_v25  ;;  %v839_v0 = vrot.slane %v68_v49, %v778_v30 }
  0x3a   :  { %v117_v61 = vrot.slane %v807_v53, %v758_v13  ;;  %v832_v62 = vrot.slane %v807_v53, %v767_v18  ;;  %v836_v63 = vrot.slane %v807_v53, %v773_v25  ;;  %vm98_vm13 = vcmp.eq.s32.totalorder %v752_v1, %v97_v58 }
  0x3b   :  { %vm99_vm14 = vcmp.eq.s32.totalorder %v755_v12, %v97_v58  ;;  %v137_v2 = vrot.slane %v821_v57, %v758_v13  ;;  %vm100_vm15 = vcmp.eq.s32.totalorder %v761_v14, %v97_v58  ;;  %v106_v3 = vsel %vm98_vm13, %v105_v44, 0.0 }
  0x3c   :  { %v107_v4 = vsel %vm99_vm14, %v105_v44, 0.0  ;;  %vm118_vm0 = vcmp.eq.s32.totalorder %v752_v1, %v117_v61  ;;  %vm119_vm1 = vcmp.eq.s32.totalorder %v755_v12, %v117_v61  ;;  %vm101_vm4 = vcmp.eq.s32.totalorder %v764_v17, %v97_v58 }
  0x3d   :  { %v126_v5 = vsel %vm118_vm0, %v125_v46, 0.0  ;;  %v127_v6 = vsel %vm119_vm1, %v125_v46, 0.0  ;;  %vm138_vm2 = vcmp.eq.s32.totalorder %v752_v1, %v137_v2  ;;  %vm139_vm3 = vcmp.eq.s32.totalorder %v755_v12, %v137_v2 }
  0x3e   :  { %v130_v7 = vadd.f32 %v126_v5, %v106_v3  ;;  %v131_v8 = vadd.f32 %v127_v6, %v107_v4  ;;  %v146_v9 = vsel %vm138_vm2, %v145_v47, 0.0  ;;  %v147_v10 = vsel %vm139_vm3, %v145_v47, 0.0 }
  0x3f   :  { %v108_v11 = vsel %vm100_vm15, %v105_v44, 0.0  ;;  %vm120_vm5 = vcmp.eq.s32.totalorder %v761_v14, %v117_v61  ;;  %vm121_vm6 = vcmp.eq.s32.totalorder %v764_v17, %v117_v61  ;;  %v109_v16 = vsel %vm101_vm4, %v105_v44, 0.0 }
  0x40   :  { %v150_v13 = vadd.f32 %v146_v9, %v130_v7  ;;  %v151_v15 = vadd.f32 %v147_v10, %v131_v8  ;;  %v128_v19 = vsel %vm120_vm5, %v125_v46, 0.0  ;;  %v129_v20 = vsel %vm121_vm6, %v125_v46, 0.0 }
  0x41   :  { %v132_v21 = vadd.f32 %v128_v19, %v108_v11  ;;  %vm140_vm7 = vcmp.eq.s32.totalorder %v761_v14, %v137_v2  ;;  %vm141_vm8 = vcmp.eq.s32.totalorder %v764_v17, %v137_v2  ;;  %v133_v22 = vadd.f32 %v129_v20, %v109_v16 }
  0x42   :  { %155 = vst.msk [vmem:[#allocation2] sm:$0xff] %vm154_vm12, %v150_v13  ;;  %156 = vst.msk [vmem:[#allocation2 + $0x8] sm:$0xff] %vm154_vm12, %v151_v15  ;;  %v148_v23 = vsel %vm140_vm7, %v145_v47, 0.0  ;;  %v149_v24 = vsel %vm141_vm8, %v145_v47, 0.0  ;;  %vm163_vm9 = vcmp.eq.s32.totalorder %v752_v1, %v162_v59  ;;  %vm164_vm10 = vcmp.eq.s32.totalorder %v755_v12, %v162_v59 }
  0x43   :  { %v152_v27 = vadd.f32 %v148_v23, %v132_v21  ;;  %v171_v28 = vsel %vm163_vm9, %v797_v48, 0.0  ;;  %vm183_vm11 = vcmp.eq.s32.totalorder %v752_v1, %v832_v62  ;;  %v153_v29 = vadd.f32 %v149_v24, %v133_v22 }
  0x44   :  { %v172_v32 = vsel %vm164_vm10, %v797_v48, 0.0  ;;  %vm184_vm13 = vcmp.eq.s32.totalorder %v755_v12, %v832_v62  ;;  %v191_v33 = vsel %vm183_vm11, %v801_v51, 0.0  ;;  %v202_v36 = vrot.slane %v821_v57, %v767_v18 }
  0x45   :  { %157 = vst.msk [vmem:[#allocation2 + $0x10] sm:$0xff] %vm154_vm12, %v152_v27  ;;  %v192_v34 = vsel %vm184_vm13, %v801_v51, 0.0  ;;  %v195_v35 = vadd.f32 %v191_v33, %v171_v28  ;;  %vm165_vm14 = vcmp.eq.s32.totalorder %v761_v14, %v162_v59  ;;  %158 = vst.msk [vmem:[#allocation2 + $0x18] sm:$0xff] %vm154_vm12, %v153_v29  ;;  %vm166_vm15 = vcmp.eq.s32.totalorder %v764_v17, %v162_v59 }
  0x46   :  { %v196_v37 = vadd.f32 %v192_v34, %v172_v32  ;;  %v173_v38 = vsel %vm165_vm14, %v797_v48, 0.0  ;;  %vm185_vm0 = vcmp.eq.s32.totalorder %v761_v14, %v832_v62  ;;  %vm203_vm1 = vcmp.eq.s32.totalorder %v752_v1, %v202_v36 }
  0x47   :  { %vm204_vm2 = vcmp.eq.s32.totalorder %v755_v12, %v202_v36  ;;  %v174_v39 = vsel %vm166_vm15, %v797_v48, 0.0  ;;  %vm186_vm3 = vcmp.eq.s32.totalorder %v764_v17, %v832_v62  ;;  %v211_v18 = vsel %vm203_vm1, %v805_v52, 0.0 }
  0x48   :  { %v212_v41 = vsel %vm204_vm2, %v805_v52, 0.0  ;;  %v193_v42 = vsel %vm185_vm0, %v801_v51, 0.0  ;;  %v194_v43 = vsel %vm186_vm3, %v801_v51, 0.0  ;;  %v215_v46 = vadd.f32 %v211_v18, %v195_v35 }
  0x49   :  { %v355_v44 = vld [vmem:[#allocation2] sm:$0xff]  ;;  %v356_v45 = vld [vmem:[#allocation2 + $0x8] sm:$0xff]  ;;  %v216_v47 = vadd.f32 %v212_v41, %v196_v37  ;;  %v197_v49 = vadd.f32 %v193_v42, %v173_v38  ;;  %v198_v50 = vadd.f32 %v194_v43, %v174_v39  ;;  %vm205_vm4 = vcmp.eq.s32.totalorder %v761_v14, %v202_v36 }
  0x4a   :  { %v569_v58 = vpack.c.bf16 %v356_v45, %v355_v44  ;;  %vm206_vm5 = vcmp.eq.s32.totalorder %v764_v17, %v202_v36  ;;  %vm227_vm6 = vcmp.eq.s32.totalorder %v752_v1, %v826_v60  ;;  %219 = vst.msk [vmem:[#allocation2 + $0x20] sm:$0xff] %vm154_vm12, %v215_v46  ;;  %v213_v48 = vsel %vm205_vm4, %v805_v52, 0.0 }
  0x4b   :  { %220 = vst.msk [vmem:[#allocation2 + $0x28] sm:$0xff] %vm154_vm12, %v216_v47  ;;  %v214_v51 = vsel %vm206_vm5, %v805_v52, 0.0  ;;  %vm228_vm7 = vcmp.eq.s32.totalorder %v755_v12, %v826_v60  ;;  %v235_v59 = vsel %vm227_vm6, %v811_v54, 0.0  ;;  %v217_v62 = vadd.f32 %v213_v48, %v197_v49 }
  0x4c   :  { %570 = vmatprep.subr.bf16.mxu0 %v569_v58  ;;  %v357_v61 = vld [vmem:[#allocation2 + $0x10] sm:$0xff]  ;;  %601 = vmatprep.subr.bf16.mxu1 %v569_v58  ;;  %v218_v2 = vadd.f32 %v214_v51, %v198_v50  ;;  %v236_v3 = vsel %vm228_vm7, %v811_v54, 0.0  ;;  %vm247_vm8 = vcmp.eq.s32.totalorder %v752_v1, %v836_v63  ;;  %v358_v4 = vld [vmem:[#allocation2 + $0x18] sm:$0xff]  ;;  %vm248_vm9 = vcmp.eq.s32.totalorder %v755_v12, %v836_v63 }
  0x4d   :  { %572 = vmatpush3.bf16.msra.mxu0 %v569_v58  ;;  %609 = vmatpush3.bf16.msra.mxu1 %v569_v58  ;;  %v255_v52 = vsel %vm247_vm8, %v815_v55, 0.0  ;;  %v266_v5 = vrot.slane %v821_v57, %v773_v25  ;;  %vm229_vm10 = vcmp.eq.s32.totalorder %v761_v14, %v826_v60  ;;  %v573_v6 = vpack.c.bf16 %v358_v4, %v357_v61  ;;  %v352_v4 = vld [vmem:[#allocation6 + $0x8] sm:$0xff] }
  0x4e   :  { %221 = vst.msk [vmem:[#allocation2 + $0x30] sm:$0xff] %vm154_vm12, %v217_v62  ;;  %222 = vst.msk [vmem:[#allocation2 + $0x38] sm:$0xff] %vm154_vm12, %v218_v2  ;;  %v256_v7 = vsel %vm248_vm9, %v815_v55, 0.0  ;;  %v259_v8 = vadd.f32 %v255_v52, %v235_v59  ;;  %vm230_vm11 = vcmp.eq.s32.totalorder %v764_v17, %v826_v60  ;;  %v237_v25 = vsel %vm229_vm10, %v811_v54, 0.0  ;;  %v354_v52 = vld [vmem:[#allocation6 + $0x18] sm:$0xff] }
  0x4f   :  { %v260_v9 = vadd.f32 %v256_v7, %v236_v3  ;;  %vm267_vm13 = vcmp.eq.s32.totalorder %v752_v1, %v266_v5  ;;  %vm268_vm14 = vcmp.eq.s32.totalorder %v755_v12, %v266_v5  ;;  %574 = vmatprep.subr.bf16.mxu0 %v573_v6  ;;  %602 = vmatprep.subr.bf16.mxu1 %v573_v6  ;;  %v238_v13 = vsel %vm230_vm11, %v811_v54, 0.0 }
  0x50   :  { %v275_v10 = vsel %vm267_vm13, %v819_v56, 0.0  ;;  %v276_v11 = vsel %vm268_vm14, %v819_v56, 0.0  ;;  %vm249_vm15 = vcmp.eq.s32.totalorder %v761_v14, %v836_v63  ;;  %vm250_vm0 = vcmp.eq.s32.totalorder %v764_v17, %v836_v63 }
  0x51   :  { %576 = vmatpush3.bf16.msra.mxu0 %v573_v6  ;;  %610 = vmatpush3.bf16.msra.mxu1 %v573_v6  ;;  %v279_v60 = vadd.f32 %v275_v10, %v259_v8  ;;  %v280_v15 = vadd.f32 %v276_v11, %v260_v9  ;;  %v257_v16 = vsel %vm249_vm15, %v815_v55, 0.0  ;;  %v359_v19 = vld [vmem:[#allocation2 + $0x20] sm:$0xff]  ;;  %v258_v21 = vsel %vm250_vm0, %v815_v55, 0.0 }
  0x52   :  { %v360_v20 = vld [vmem:[#allocation2 + $0x28] sm:$0xff]  ;;  %v261_v22 = vadd.f32 %v257_v16, %v237_v25  ;;  %vm269_vm1 = vcmp.eq.s32.totalorder %v761_v14, %v266_v5  ;;  %vm270_vm2 = vcmp.eq.s32.totalorder %v764_v17, %v266_v5  ;;  %v262_v23 = vadd.f32 %v258_v21, %v238_v13 }
  0x53   :  { %v577_v54 = vpack.c.bf16 %v360_v20, %v359_v19  ;;  %283 = vst.msk [vmem:[#allocation2 + $0x40] sm:$0xff] %vm154_vm12, %v279_v60  ;;  %284 = vst.msk [vmem:[#allocation2 + $0x48] sm:$0xff] %vm154_vm12, %v280_v15  ;;  %v277_v24 = vsel %vm269_vm1, %v819_v56, 0.0  ;;  %v278_v63 = vsel %vm270_vm2, %v819_v56, 0.0  ;;  %vm291_vm3 = vcmp.eq.s32.totalorder %v752_v1, %v839_v0 }
  0x54   :  { %v281_v27 = vadd.f32 %v277_v24, %v261_v22  ;;  %vm292_vm4 = vcmp.eq.s32.totalorder %v755_v12, %v839_v0  ;;  %v298_v55 = vrot.slane %v775_v26, %v778_v30  ;;  %v282_v32 = vadd.f32 %v278_v63, %v262_v23 }
  0x55   :  { %578 = vmatprep.subr.bf16.mxu0 %v577_v54  ;;  %v361_v28 = vld [vmem:[#allocation2 + $0x30] sm:$0xff]  ;;  %v362_v29 = vld [vmem:[#allocation2 + $0x38] sm:$0xff]  ;;  %603 = vmatprep.subr.bf16.mxu1 %v577_v54  ;;  %v310_v33 = vrot.slane %v807_v53, %v778_v30  ;;  %v318_v56 = vrot.slane %v784_v31, %v778_v30  ;;  %v330_v26 = vrot.slane %v821_v57, %v778_v30 }
  0x56   :  { %580 = vmatpush3.bf16.msra.mxu0 %v577_v54  ;;  %v581_v34 = vpack.c.bf16 %v362_v29, %v361_v28  ;;  %611 = vmatpush3.bf16.msra.mxu1 %v577_v54  ;;  %285 = vst.msk [vmem:[#allocation2 + $0x50] sm:$0xff] %vm154_vm12, %v281_v27  ;;  %v299_v35 = vsel %vm291_vm3, %v298_v55, 0.0  ;;  %v300_v36 = vsel %vm292_vm4, %v298_v55, 0.0  ;;  %286 = vst.msk [vmem:[#allocation2 + $0x58] sm:$0xff] %vm154_vm12, %v282_v32 }
  0x57   :  { %vm311_vm5 = vcmp.eq.s32.totalorder %v752_v1, %v310_v33  ;;  %vm312_vm6 = vcmp.eq.s32.totalorder %v755_v12, %v310_v33  ;;  %v338_v53 = vrot.slane %v786_v40, %v778_v30  ;;  %vm293_vm7 = vcmp.eq.s32.totalorder %v761_v14, %v839_v0 }
  0x58   :  { %582 = vmatprep.subr.bf16.mxu0 %v581_v34  ;;  %604 = vmatprep.subr.bf16.mxu1 %v581_v34  ;;  %v319_v31 = vsel %vm311_vm5, %v318_v56, 0.0  ;;  %v320_v37 = vsel %vm312_vm6, %v318_v56, 0.0  ;;  %vm331_vm8 = vcmp.eq.s32.totalorder %v752_v1, %v330_v26  ;;  %vm332_vm9 = vcmp.eq.s32.totalorder %v755_v12, %v330_v26 }
  0x59   :  { %v323_v57 = vadd.f32 %v319_v31, %v299_v35  ;;  %v324_v38 = vadd.f32 %v320_v37, %v300_v36  ;;  %v339_v39 = vsel %vm331_vm8, %v338_v53, 0.0  ;;  %v340_v18 = vsel %vm332_vm9, %v338_v53, 0.0 }
  0x5a   :  { %584 = vmatpush3.bf16.msra.mxu0 %v581_v34  ;;  %v363_v41 = vld [vmem:[#allocation2 + $0x40] sm:$0xff]  ;;  %v364_v42 = vld [vmem:[#allocation2 + $0x48] sm:$0xff]  ;;  %612 = vmatpush3.bf16.msra.mxu1 %v581_v34  ;;  %vm294_vm10 = vcmp.eq.s32.totalorder %v764_v17, %v839_v0  ;;  %v301_v30 = vsel %vm293_vm7, %v298_v55, 0.0  ;;  %vm313_vm11 = vcmp.eq.s32.totalorder %v761_v14, %v310_v33  ;;  %vm314_vm13 = vcmp.eq.s32.totalorder %v764_v17, %v310_v33 }
  0x5b   :  { %v585_v1 = vpack.c.bf16 %v364_v42, %v363_v41  ;;  %v343_v12 = vadd.f32 %v339_v39, %v323_v57  ;;  %v344_v40 = vadd.f32 %v340_v18, %v324_v38  ;;  %v302_v43 = vsel %vm294_vm10, %v298_v55, 0.0 }
  0x5c   :  { %v321_v44 = vsel %vm313_vm11, %v318_v56, 0.0  ;;  %v322_v45 = vsel %vm314_vm13, %v318_v56, 0.0  ;;  %vm333_vm14 = vcmp.eq.s32.totalorder %v761_v14, %v330_v26  ;;  %vm334_vm15 = vcmp.eq.s32.totalorder %v764_v17, %v330_v26 }
  0x5d   :  { %586 = vmatprep.subr.bf16.mxu0 %v585_v1  ;;  %v365_v46 = vld [vmem:[#allocation2 + $0x50] sm:$0xff]  ;;  %605 = vmatprep.subr.bf16.mxu1 %v585_v1  ;;  %347 = vst.msk [vmem:[#allocation2 + $0x60] sm:$0xff] %vm154_vm12, %v343_v12  ;;  %348 = vst.msk [vmem:[#allocation2 + $0x68] sm:$0xff] %vm154_vm12, %v344_v40  ;;  %v325_v0 = vadd.f32 %v321_v44, %v301_v30  ;;  %v326_v47 = vadd.f32 %v322_v45, %v302_v43  ;;  %v341_v49 = vsel %vm333_vm14, %v338_v53, 0.0  ;;  %v366_v58 = vld [vmem:[#allocation2 + $0x58] sm:$0xff] }
  0x5e   :  { %v342_v50 = vsel %vm334_vm15, %v338_v53, 0.0  ;;  %588 = vmatpush3.bf16.msra.mxu0 %v585_v1  ;;  %613 = vmatpush3.bf16.msra.mxu1 %v585_v1  ;;  %v589_v48 = vpack.c.bf16 %v366_v58, %v365_v46 }
  0x5f   :  { %v345_v51 = vadd.f32 %v341_v49, %v325_v0  ;;  %v346_v59 = vadd.f32 %v342_v50, %v326_v47 }
  0x60   :  { %590 = vmatprep.subr.bf16.mxu0 %v589_v48  ;;  %606 = vmatprep.subr.bf16.mxu1 %v589_v48 }
  0x61   :  { %349 = vst.msk [vmem:[#allocation2 + $0x70] sm:$0xff] %vm154_vm12, %v345_v51  ;;  %350 = vst.msk [vmem:[#allocation2 + $0x78] sm:$0xff] %vm154_vm12, %v346_v59  ;;  %vm490_vm12 = vcmask 261120  }
  0x62   :  { %592 = vmatpush3.bf16.msra.mxu0 %v589_v48  ;;  %614 = vmatpush3.bf16.msra.mxu1 %v589_v48 }
  0x64   :  { %v367_v14 = vld [vmem:[#allocation2 + $0x60] sm:$0xff]  ;;  %v368_v17 = vld [vmem:[#allocation2 + $0x68] sm:$0xff] }
  0x65   :  { %v593_v61 = vpack.c.bf16 %v368_v17, %v367_v14 }
  0x67   :  { %594 = vmatprep.subr.bf16.mxu0 %v593_v61  ;;  %607 = vmatprep.subr.bf16.mxu1 %v593_v61 }
  0x68   :  { %596 = vmatpush3.bf16.msra.mxu0 %v593_v61  ;;  %v369_v62 = vld [vmem:[#allocation2 + $0x70] sm:$0xff]  ;;  %v370_v2 = vld [vmem:[#allocation2 + $0x78] sm:$0xff]  ;;  %615 = vmatpush3.bf16.msra.mxu1 %v593_v61 }
  0x69   :  { %v597_v3 = vpack.c.bf16 %v370_v2, %v369_v62 }
  0x6b   :  { %598 = vmatprep.subr.bf16.mxu0 %v597_v3  ;;  %608 = vmatprep.subr.bf16.mxu1 %v597_v3 }
  0x6c   :  { %600 = vmatpush3.bf16.msra.mxu0 %v597_v3  ;;  %616 = vmatpush3.bf16.msra.mxu1 %v597_v3 }
  0x6f   :  { %564 = vmatmul.mubr.f32.vlgmr.msra.gmra.mrb[0].mxu0 %v352_v4  ;;  %567 = vmatmul.mubr.f32.vlgmr.msra.gmra.mrb[0].mxu1 %v354_v52 }
 0x142   :  { %v565_v5 = vpop.f32.mrb[0].mxu0  ;;  %v568_v6 = vpop.f32.mrb[0].mxu1 }
 0x143   :  { %v437_v7 = vpop.f32.mrb[1].mxu0  ;;  %v447_v8 = vpop.f32.mrb[1].mxu1 }
 0x144   :  { %456 = vxpose.xlu0.b32.start [1/4] (short) (narrow) %v437_v7, 16 }
 0x148   :  { %457 = vxpose.xlu0.b32.cont [2/4] (short) (narrow) %v565_v5, 16 }
 0x14c   :  { %458 = vxpose.xlu0.b32.cont [3/4] (short) (narrow) %v447_v8, 16 }
 0x150   :  { %459 = vxpose.xlu0.b32.end [4/4] (short) (narrow) %v568_v6, 16 }
 0x1c4   :  { %v472_v9 = vpop.trf.xlu0 }
 0x1c5   :  { %v488_v25 = vmul.f32 1.5, %v472_v9 }
 0x1c7   :  { %491 = vst.msk [vmem:[#allocation8] sm:$0xff] %vm490_vm12, %v488_v25 }
 0x1c8   :  { %v473_v10 = vpop.trf.xlu0 }
 0x1c9   :  { %v489_v11 = vmul.f32 1.5, %v473_v10 }
 0x1cb   :  { %492 = vst.msk [vmem:[#allocation8 + $0x8] sm:$0xff] %vm490_vm12, %v489_v11 }
 0x1cc   :  { %683 = shalt.err (!%p680_p6)
}
 0x1cd   :  { %s684_s12 = scalar_lea.hbm %s981_s2, 256 }
 0x1ce   :  { %p685_p7 = scmp.ne.s32.totalorder %s981_s2, %s684_s12  ;;  %p688_p8 = scmp.lt.u32.totalorder %s684_s12, %s981_s2 }
 0x1d0   :  { %p690_p9 = pnand %p688_p8, %p685_p7 }
 0x1d2   :  { %693 = shalt.err (!%p690_p9)
}
 0x1d3   :  { %504 = dma.vmem_to_hbm [thread:$0]  %s499_s8, 256, %s981_s2, [#allocation5], %s704_s0, %s704_s0, %s705_s5  }
 0x1d4   :  { %698 = dma.done.wait [#allocation5], 256  }
 0x1d5   :  { %699 = vsyncadd [#allocation5], 4294967040 }
 0x1d6   :  { %508 = vsyncpa [#allocation4], 1 }
 0x1d7   :  { %509 = vsyncpa [#allocation7], 1 }
 0x1d8   :  { %510 = vsyncpa [#allocation5], 1 }

</bundles_post_ra>
